<compile_context>
chip_gen: v6e
topology: v6e:2x2x1
jax: 0.10.0
libtpu: 0.0.40
codegen_flags: <defaults>
</compile_context>

<pallas_src>
import jax
import jax.numpy as jnp
from jax.experimental import pallas as pl
from jax.experimental.pallas import tpu as pltpu


# ----------------------------------------------------------------------------
# Chip detection (wrapper-side, plain JAX — no effect on kernel correctness).
# ----------------------------------------------------------------------------
_TPU_KIND = ""
try:
    _TPU_KIND = jax.devices()[0].device_kind.lower()
except Exception:  # pragma: no cover - defensive; default to conservative path
    _TPU_KIND = ""

_IS_V7X = "v7" in _TPU_KIND
# bf16 VPU/EUP exists on v6e and later; v5e (and older) must upcast to f32.
_HAS_BF16_VPU = ("v6" in _TPU_KIND) or ("v7" in _TPU_KIND)

# Per-tile VMEM budget. With input+output each double-buffered, peak VMEM is
# ~4x this. v5e/v6e: 128 MiB physical -> 8 MiB tiles / 48 MiB limit.
# v7x: 64 MiB physical (32 MiB scoped default) -> 4 MiB tiles / 32 MiB limit.
_TILE_BYTES_BUDGET = (4 if _IS_V7X else 8) * 1024 * 1024
_VMEM_LIMIT_BYTES = (32 if _IS_V7X else 48) * 1024 * 1024

# Below this size, a Pallas custom call's dispatch overhead dominates; let XLA
# fuse the elementwise op instead.
_TINY_BYPASS_BYTES = 256 * 1024

_LANE_PAD = 8 * 128  # pad unit: one full f32 vreg footprint (8 sublanes x 128 lanes)


# ----------------------------------------------------------------------------
# Kernel
# ----------------------------------------------------------------------------
def _make_silu_kernel(compute_in_f32: bool):
    """SiLU kernel factory; compute dtype chosen by the wrapper per chip/dtype."""

    def _silu_kernel(x_ref, o_ref):
        x = x_ref[...]
        if compute_in_f32:
            # f32 math (no-op cast for f32 I/O; required for bf16 on v5e).
            xf = x.astype(jnp.float32)
            y = xf * jax.nn.sigmoid(xf)
            o_ref[...] = y.astype(o_ref.dtype)
        else:
            # Native bf16 math on v6e/v7x: halves VALU pressure, 2 elems/lane.
            o_ref[...] = x * jax.nn.sigmoid(x)

    return _silu_kernel


def _silu_ref(x: jax.Array) -> jax.Array:
    return x * jax.nn.sigmoid(x)


# ----------------------------------------------------------------------------
# Layout selection
# ----------------------------------------------------------------------------
def _choose_layout(padded_total: int, itemsize: int):
    """Pick a lane-dense (rows, cols, tile_rows) factorization of padded_total.

    `padded_total` is always a multiple of 1024, so cols >= 1024.
    """
    cols = 1024
    for c in (8192, 4096, 2048, 1024):
        if padded_total % c == 0:
            cols = c
            break
    rows = padded_total // cols
    # Biggest 32-aligned row tile that fits the per-tile byte budget
    # (32-aligned so bf16/int8/fp8 packed layouts never need relayout copies).
    max_tile_rows = max(32, (_TILE_BYTES_BUDGET // (cols * itemsize)) // 32 * 32)
    tile_rows = rows if rows <= max_tile_rows else max_tile_rows
    return rows, cols, tile_rows


# ----------------------------------------------------------------------------
# Wrapper
# ----------------------------------------------------------------------------
def func_module_silu(x: jax.Array, *, force_pallas: bool = False) -> jax.Array:
    """Pallas implementation of FuncModule(torch.nn.functional.silu)(x).

    Elementwise and layout-agnostic: any shape/dtype in, same shape/dtype out.
    """
    orig_shape = x.shape
    total = x.size
    itemsize = jnp.dtype(x.dtype).itemsize

    if total == 0:
        return x

    # Tiny-input bypass: let XLA fuse the elementwise op (faster than a
    # custom-call dispatch for small slabs).
    if not force_pallas and total * itemsize < _TINY_BYPASS_BYTES:
        return _silu_ref(x)

    # --- Lane-dense 2-D layout with padding -------------------------------
    flat = x.reshape(-1)
    padded_total = pl.cdiv(total, _LANE_PAD) * _LANE_PAD
    rows, cols, tile_rows = _choose_layout(padded_total, itemsize)

    # Pad rows to a multiple of tile_rows so every grid step is a full block.
    grid_rows = pl.cdiv(rows, tile_rows)
    rows_padded = grid_rows * tile_rows
    padded_total = rows_padded * cols
    if padded_total != total:
        flat = jnp.pad(flat, (0, padded_total - total))
    x2d = flat.reshape(rows_padded, cols)

    # --- Compute-dtype and megacore policy ---------------------------------
    compute_in_f32 = not (x.dtype == jnp.bfloat16 and _HAS_BF16_VPU)
    kernel = _make_silu_kernel(compute_in_f32)

    if _IS_V7X and grid_rows > 1 and hasattr(pltpu, "CORE_PARALLEL"):
        # Shard row tiles across v7x's 2 TensorCores (~2x HBM bandwidth).
        dim_semantics = (pltpu.CORE_PARALLEL,)
    else:
        dim_semantics = ("parallel",)

    out2d = pl.pallas_call(
        kernel,
        out_shape=jax.ShapeDtypeStruct((rows_padded, cols), x.dtype),
        grid=(grid_rows,),
        in_specs=[pl.BlockSpec((tile_rows, cols), lambda i: (i, 0))],
        out_specs=pl.BlockSpec((tile_rows, cols), lambda i: (i, 0)),
        compiler_params=pltpu.CompilerParams(
            dimension_semantics=dim_semantics,
            vmem_limit_bytes=_VMEM_LIMIT_BYTES,
        ),
    )(x2d)

    out = out2d.reshape(-1)
    if padded_total != total:
        out = out[:total]
    return out.reshape(orig_shape)


if __name__ == "__main__":
    key = jax.random.PRNGKey(0)

    # Toy NCHW input, forced through the Pallas kernel (single (1,2048) block).
    x = jax.random.normal(key, (2, 4, 16, 16), dtype=jnp.float32)
    y = func_module_silu(x, force_pallas=True)
    jax.block_until_ready(y)
    y_ref = x * jax.nn.sigmoid(x)
    assert y.shape == x.shape and y.dtype == x.dtype
    assert jnp.allclose(y, y_ref, atol=1e-6, rtol=1e-6)

    # Non-128-divisible element count: exercises the pad + slice-off path.
    x2 = jax.random.normal(jax.random.PRNGKey(1), (3, 5, 7), dtype=jnp.float32)
    y2 = func_module_silu(x2, force_pallas=True)
    jax.block_until_ready(y2)
    assert y2.shape == x2.shape and y2.dtype == x2.dtype
    assert jnp.allclose(y2, x2 * jax.nn.sigmoid(x2), atol=1e-6, rtol=1e-6)

    # Tiny-input bypass path (XLA-fused) — semantics identical.
    y3 = func_module_silu(x)
    jax.block_until_ready(y3)
    assert jnp.allclose(y3, y_ref, atol=1e-6, rtol=1e-6)

    print("KERNEL_OK")
</pallas_src>

<mosaic_0001>
module attributes {stable_mosaic.version = 11 : i64} {
  func.func @_silu_kernel(%arg0: i32, %arg1: memref<1x2048xf32, #tpu.memory_space<vmem>>, %arg2: memref<1x2048xf32, #tpu.memory_space<vmem>>) attributes {dimension_semantics = [#tpu.dimension_semantics<parallel>], iteration_bounds = array<i64: 1>, scalar_prefetch = 0 : i64, scratch_operands = 0 : i64, tpu.core_type = #tpu.core_type<tc>, window_params = [{transform_indices = @transform_0, window_bounds = array<i64: 1, 2048>}, {transform_indices = @transform_1, window_bounds = array<i64: 1, 2048>}]} {
    %c0 = arith.constant 0 : index
    %c0_0 = arith.constant 0 : index
    %0 = vector.load %arg1[%c0, %c0_0] : memref<1x2048xf32, #tpu.memory_space<vmem>>, vector<1x2048xf32>
    %1 = arith.negf %0 : vector<1x2048xf32>
    %2 = math.exp %1 : vector<1x2048xf32>
    %cst = arith.constant 1.000000e+00 : f32
    %3 = vector.broadcast %cst : f32 to vector<1x2048xf32>
    %4 = arith.addf %3, %2 : vector<1x2048xf32>
    %5 = arith.divf %3, %4 : vector<1x2048xf32>
    %6 = arith.mulf %0, %5 : vector<1x2048xf32>
    %c0_1 = arith.constant 0 : index
    %c0_2 = arith.constant 0 : index
    %7 = vector.load %arg2[%c0_1, %c0_2] : memref<1x2048xf32, #tpu.memory_space<vmem>>, vector<1x2048xf32>
    tpu.vector_store %arg2[%c0_1, %c0_2], %6 {strides = array<i32>} : memref<1x2048xf32, #tpu.memory_space<vmem>>, vector<1x2048xf32>,
    return
  }
  func.func @transform_0(%arg0: i32) -> (i32, i32) {
    %c0_i32 = arith.constant 0 : i32
    %c0_i32_0 = arith.constant 0 : i32
    return %arg0, %c0_i32 : i32, i32
  }
  func.func @transform_1(%arg0: i32) -> (i32, i32) {
    %c0_i32 = arith.constant 0 : i32
    %c0_i32_0 = arith.constant 0 : i32
    return %arg0, %c0_i32 : i32, i32
  }
}

</mosaic_0001>

<bundles_post_ra>
// kernel: tpu_custom_call.1
= control target key start
LH: loop header
LB: loop body
LE: loop exit
PB: predicated region body
PF: predicated region fallthrough
CT: control target
= control target key end

     0   :  { %6 = vsyncpa [#allocation3], 0  ;;  %s128_s0 = inlined_call_operand.hbm [shape: f32[1,2048], index: 0, kind: input, shape index: {}]   ;;  %s129_s1 = inlined_call_operand.hbm [shape: f32[1,2048], index: 1, kind: output, shape index: {}]  }
   0x1   :  { %7 = vsyncpa [#allocation4], 0  ;;  %s110_s6 = smov [#allocation2]  }
   0x2   :  { %s14_s7 = sshll.u32 %s110_s6, 4  ;;  %s15_s7 = int_to_ptr.vmem [resolvable:$true] %s14_s7 }
   0x3   :  { %s74_s8 = scalar_lea.vmem %s15_s7, 256  ;;  %p79_p1 = scmp.lt.s32.totalorder %s15_s7, %s15_s7 }
   0x4   :  { %p75_p0 = scmp.ne.s32.totalorder %s15_s7, %s74_s8  ;;  %p80_p2 = scmp.lt.s32.totalorder %s74_s8, %s74_s8 }
   0x6   :  { %p81_p3 = por %p80_p2, %p79_p1 }
   0x8   :  { %p82_p4 = pnand %p81_p3, %p75_p0 }
   0xa   :  { %85 = shalt.err (!%p82_p4)
}
   0xb   :  { %17 = dma.hbm_to_vmem [thread:$0]  %s128_s0, 256, %s15_s7, [#allocation3]  }
   0xc   :  { %106 = dma.done.wait [#allocation3], 256  }
   0xd   :  { %107 = vsyncadd [#allocation3], 4294967040  ;;  %v21_v0 = vld [vmem:[#allocation2] sm:$0xff]  ;;  %v22_v1 = vld [vmem:[#allocation2 + $0x8] sm:$0xff]  ;;  %s111_s11 = smov [#allocation5]  }
   0xe   :  { %v54_v2 = vmul.f32 -1.442695, %v21_v0  ;;  %v55_v3 = vmul.f32 -1.442695, %v22_v1  ;;  %s45_s12 = sshll.u32 %s111_s11, 4  ;;  %s46_s12 = int_to_ptr.vmem [resolvable:$true] %s45_s12 }
   0xf   :  { %s86_s0 = scalar_lea.vmem %s46_s12, 256  ;;  %p91_p6 = scmp.lt.s32.totalorder %s46_s12, %s46_s12 }
  0x10   :  { %58 = vpow2.f32 %v54_v2  ;;  %p87_p5 = scmp.ne.s32.totalorder %s46_s12, %s86_s0  ;;  %p92_p7 = scmp.lt.s32.totalorder %s86_s0, %s86_s0 }
  0x11   :  { %60 = vpow2.f32 %v55_v3 }
  0x12   :  { %p93_p8 = por %p92_p7, %p91_p6 }
  0x14   :  { %p94_p9 = pnand %p93_p8, %p87_p5 }
  0x1d   :  { %v59_v4 = vpop.eup %58 }
  0x1e   :  { %v61_v5 = vpop.eup %60  ;;  %v29_v6 = vadd.f32 1.0, %v59_v4 }
  0x1f   :  { %v30_v7 = vadd.f32 1.0, %v61_v5 }
  0x20   :  { %62 = vrcp.f32 %v29_v6 }
  0x21   :  { %64 = vrcp.f32 %v30_v7 }
  0x2d   :  { %v63_v8 = vpop.eup %62 }
  0x2e   :  { %v65_v9 = vpop.eup %64  ;;  %v35_v10 = vmul.f32 %v63_v8, %v21_v0 }
  0x2f   :  { %v36_v11 = vmul.f32 %v65_v9, %v22_v1 }
  0x30   :  { %37 = vst [vmem:[#allocation5] sm:$0xff] %v35_v10 }
  0x31   :  { %38 = vst [vmem:[#allocation5 + $0x8] sm:$0xff] %v36_v11 }
  0x32   :  { %97 = shalt.err (!%p94_p9)
}
  0x33   :  { %48 = dma.vmem_to_hbm [thread:$0]  %s46_s12, 256, %s129_s1, [#allocation4]  }
  0x34   :  { %108 = dma.done.wait [#allocation4], 256  }
  0x35   :  { %109 = vsyncadd [#allocation4], 4294967040 }
  0x36   :  { %52 = vsyncpa [#allocation3], 1 }
  0x37   :  { %53 = vsyncpa [#allocation4], 1 }

</bundles_post_ra>
